<compile_context>
chip_gen: v7x
topology: tpu7x:2x2x1
jax: 0.10.0
libtpu: 0.0.40
codegen_flags: <defaults>
</compile_context>

<pallas_src>
import functools

import jax
import jax.numpy as jnp
from jax.experimental import pallas as pl
from jax.experimental.pallas import tpu as pltpu


# ----------------------------------------------------------------------------
# Constants (synthesized sub-module sizes — same stand-ins as before)
# ----------------------------------------------------------------------------
ENC_DIM = 32            # encoder.out_dim
NECK_DIM = 32           # neck.out_dim (modulation_dim)
DEC_IN = 5              # input_rgb=True -> 2 (rel coord) + 3 (rgb)
N_FORWARD_TIMES = 2

PACK_K = 128            # lane-dense packed decoder-input width
RGB_OFF = 4 + 2 * NECK_DIM   # = 68 : [rel(2) | coord(2) | mods(32) | gmods(32) | rgb(3) | 0-pad]


# ----------------------------------------------------------------------------
# Pallas kernel: y = relu(x @ w1 + b1) @ w2 + b2, rows tiled
# ----------------------------------------------------------------------------
def _mlp2_kernel(x_ref, w1_ref, b1_ref, w2_ref, b2_ref, o_ref):
    h = jnp.dot(x_ref[...], w1_ref[...], preferred_element_type=jnp.float32)
    h = jnp.maximum(h + b1_ref[...], 0.0)
    y = jnp.dot(h, w2_ref[...], preferred_element_type=jnp.float32) + b2_ref[...]
    o_ref[...] = y.astype(o_ref.dtype)


def _pick_tm(M, max_tm=2048):
    """Row-tile size: multiple of 8 (sublane), capped, and aiming for >= 2 grid
    steps so the 'parallel' axis can use both TensorCores on v7x."""
    half = -(-M // 2)
    tm = min(max_tm, max(8, -(-half // 8) * 8))
    return min(tm, -(-M // 8) * 8)


def pallas_mlp2(x, w1, b1, w2, b2, *, max_tm=2048):
    M, K = x.shape
    Hd = w1.shape[1]
    N = w2.shape[1]
    tm = _pick_tm(M, max_tm)
    # NOTE: output last dim may be narrow (3); at very large M a lane-dense
    # output slab would further cut store cost (low priority at these sizes).
    return pl.pallas_call(
        _mlp2_kernel,
        out_shape=jax.ShapeDtypeStruct((M, N), jnp.float32),
        grid=(pl.cdiv(M, tm),),
        in_specs=[
            pl.BlockSpec((tm, K), lambda i: (i, 0)),
            pl.BlockSpec((K, Hd), lambda i: (0, 0)),
            pl.BlockSpec((1, Hd), lambda i: (0, 0)),
            pl.BlockSpec((Hd, N), lambda i: (0, 0)),
            pl.BlockSpec((1, N), lambda i: (0, 0)),
        ],
        out_specs=pl.BlockSpec((tm, N), lambda i: (i, 0)),
        compiler_params=pltpu.CompilerParams(
            dimension_semantics=("parallel",),
            vmem_limit_bytes=32 * 1024 * 1024,
        ),
    )(x, w1, b1.reshape(1, Hd), w2, b2.reshape(1, N))


# ----------------------------------------------------------------------------
# Plain-JAX glue (sampling / coordinate math) — NHWC everywhere, no dead copies
# ----------------------------------------------------------------------------
def grid_sample_bilinear_nhwc(img, coord):
    """img: (B, H, W, C). Emulates torch F.grid_sample(img_nchw, coord.flip(-1)[:,None],
    mode='bilinear', padding_mode='border', align_corners=True) -> (B, N, C).
    coord[..., 0] indexes H, coord[..., 1] indexes W (both in [-1, 1])."""
    B, H, W, C = img.shape
    y = (coord[..., 0] + 1.0) * 0.5 * (H - 1)
    x = (coord[..., 1] + 1.0) * 0.5 * (W - 1)
    y0 = jnp.floor(y)
    x0 = jnp.floor(x)
    wy1, wx1 = y - y0, x - x0
    wy0, wx0 = 1.0 - wy1, 1.0 - wx1
    y0i = jnp.clip(y0, 0, H - 1).astype(jnp.int32)
    y1i = jnp.clip(y0 + 1, 0, H - 1).astype(jnp.int32)
    x0i = jnp.clip(x0, 0, W - 1).astype(jnp.int32)
    x1i = jnp.clip(x0 + 1, 0, W - 1).astype(jnp.int32)
    flat = img.reshape(B, H * W, C)

    def gather(yi, xi):
        idx = (yi * W + xi)[..., None]                       # (B, N, 1)
        return jnp.take_along_axis(flat, idx, axis=1)        # (B, N, C)

    return (gather(y0i, x0i) * (wy0 * wx0)[..., None]
            + gather(y0i, x1i) * (wy0 * wx1)[..., None]
            + gather(y1i, x0i) * (wy1 * wx0)[..., None]
            + gather(y1i, x1i) * (wy1 * wx1)[..., None])


def nearest_feat_coord(coord, H, W):
    """Nearest-neighbor grid_sample (align_corners=True) of the pixel-center
    coordinate map to_coordinates(H, W) whose values are -1 + (2i+1)/size."""
    iy = jnp.clip(jnp.round((coord[..., 0] + 1.0) * 0.5 * (H - 1)), 0, H - 1)
    ix = jnp.clip(jnp.round((coord[..., 1] + 1.0) * 0.5 * (W - 1)), 0, W - 1)
    cy = -1.0 + (2.0 * iy + 1.0) / H
    cx = -1.0 + (2.0 * ix + 1.0) / W
    return jnp.stack([cy, cx], axis=-1)


# ----------------------------------------------------------------------------
# Parameters (same synthesized stand-ins / init as previous revision)
# ----------------------------------------------------------------------------
def init_params(key):
    ks = jax.random.split(key, 16)
    g = lambda k, shape, fan: (jax.random.normal(k, shape, jnp.float32)
                               / jnp.sqrt(jnp.float32(fan)))
    return {
        "enc_w": g(ks[0], (ENC_DIM, 3, 3, 3), 27),          # Conv2d(3,32,3,pad=1), (out,in,kh,kw)
        "enc_b": g(ks[1], (ENC_DIM,), 27),
        "neck_w": g(ks[2], (ENC_DIM, NECK_DIM), ENC_DIM),   # 1x1 conv (as matmul)
        "neck_b": g(ks[3], (NECK_DIM,), ENC_DIM),
        "gc_w": g(ks[4], (NECK_DIM, NECK_DIM), NECK_DIM),   # neck global linear
        "gc_b": g(ks[5], (NECK_DIM,), NECK_DIM),
        "dec_w1": g(ks[6], (DEC_IN, NECK_DIM), DEC_IN),
        "dec_b1": g(ks[7], (NECK_DIM,), DEC_IN),
        "dec_w2": g(ks[8], (NECK_DIM, 3), NECK_DIM),
        "dec_b2": g(ks[9], (3,), NECK_DIM),
        "gdec_w1": g(ks[10], (DEC_IN, NECK_DIM), DEC_IN),
        "gdec_b1": g(ks[11], (NECK_DIM,), DEC_IN),
        "gdec_w2": g(ks[12], (NECK_DIM, 3), NECK_DIM),
        "gdec_b2": g(ks[13], (3,), NECK_DIM),
        "proj_in_w": g(ks[14], (NECK_DIM, NECK_DIM), NECK_DIM),
        "proj_in_b": jnp.zeros((NECK_DIM,), jnp.float32),
        "proj_out_w": g(ks[15], (3, 3), 3),
        "proj_out_b": jnp.zeros((3,), jnp.float32),
    }


def build_fused_decoder_weights(p):
    """Trace-time fold of {decoder, global_decoder, output_proj} into one 2-layer
    MLP acting on the packed (M, 128) slab:
        cols [0:2]=rel, [2:4]=coord, [4:36]=mods, [36:68]=gmods, [68:71]=rgb, rest 0.
    The identity blocks in W1 implement the '+ modulation' adds."""
    C = NECK_DIM
    w1 = jnp.zeros((PACK_K, 2 * C), jnp.float32)
    w1 = w1.at[0:2, 0:C].set(p["dec_w1"][0:2])                 # rel coord  -> local head
    w1 = w1.at[2:4, C:2 * C].set(p["gdec_w1"][0:2])            # abs coord  -> global head
    w1 = w1.at[4:4 + C, 0:C].set(jnp.eye(C, dtype=jnp.float32))          # + modulations
    w1 = w1.at[4 + C:4 + 2 * C, C:2 * C].set(jnp.eye(C, dtype=jnp.float32))  # + global mods
    w1 = w1.at[RGB_OFF:RGB_OFF + 3, 0:C].set(p["dec_w1"][2:5])     # rgb -> local head
    w1 = w1.at[RGB_OFF:RGB_OFF + 3, C:2 * C].set(p["gdec_w1"][2:5])  # rgb -> global head
    b1 = jnp.concatenate([p["dec_b1"], p["gdec_b1"]])
    # output_proj folded: out = (dec + gdec) @ pw + pb
    w2 = jnp.concatenate([p["dec_w2"] @ p["proj_out_w"],
                          p["gdec_w2"] @ p["proj_out_w"]], axis=0)
    b2 = (p["dec_b2"] + p["gdec_b2"]) @ p["proj_out_w"] + p["proj_out_b"]
    return w1, b1, w2, b2


# ----------------------------------------------------------------------------
# RSSuper forward
# ----------------------------------------------------------------------------
def forward_backbone_neck(p, inp):
    """encoder(conv3x3+relu) + neck(1x1 conv) fused in one Pallas kernel.
    Returns the NHWC input, NHWC x_rep, and the neck's global content."""
    B, _, H, W = inp.shape
    x_nhwc = inp.transpose(0, 2, 3, 1)                            # (B, H, W, 3)
    xp = jnp.pad(x_nhwc, ((0, 0), (1, 1), (1, 1), (0, 0)))
    cols = [xp[:, dy:dy + H, dx:dx + W, :] for dy in range(3) for dx in range(3)]
    patches = jnp.concatenate(cols, axis=-1).reshape(B * H * W, 27)   # (kh, kw, Cin) order
    enc_w = p["enc_w"].transpose(2, 3, 1, 0).reshape(27, ENC_DIM)     # -> (kh, kw, Cin, Cout)

    # x_rep = neck_1x1(relu(conv3x3(inp)));  encoder feature map never written to HBM
    xrep_flat = pallas_mlp2(patches, enc_w, p["enc_b"], p["neck_w"], p["neck_b"])
    x_rep = xrep_flat.reshape(B, H, W, NECK_DIM)                      # NHWC

    # global content = Linear(GAP(x_rep))  (tiny: plain JAX)
    gap = xrep_flat.reshape(B, H * W, NECK_DIM).mean(axis=1)          # (B, C)
    global_content = (gap @ p["gc_w"] + p["gc_b"])[:, None, :]        # (B, 1, C)
    return x_nhwc, x_rep, global_content


def rs_super_forward(p, inp, coord):
    B, _, H, W = inp.shape
    N = coord.shape[1]
    M = B * N

    x_nhwc, x_rep, global_content = forward_backbone_neck(p, inp)

    # ---- loop-invariant query-side work (hoisted out of n_forward_times) ----
    mods = grid_sample_bilinear_nhwc(x_rep, coord).reshape(M, NECK_DIM)
    nearest = nearest_feat_coord(coord, H, W)
    rel = ((coord - nearest) * jnp.array([H, W], jnp.float32)).reshape(M, 2)
    coord_flat = coord.reshape(M, 2)
    # global decoder: decoder_is_proj=True, grid_global=False
    gcontent = global_content[:, 0, :] @ p["proj_in_w"] + p["proj_in_b"]       # input_proj
    gmods = jnp.broadcast_to(gcontent[:, None, :], (B, N, NECK_DIM)).reshape(M, NECK_DIM)

    base = jnp.concatenate([rel, coord_flat, mods, gmods], axis=1)    # (M, 68)
    zpad = jnp.zeros((M, PACK_K - RGB_OFF - 3), jnp.float32)
    w1, b1, w2, b2 = build_fused_decoder_weights(p)

    # iteration 0: interpolated rgb from the input image; later: previous prediction
    rgb = grid_sample_bilinear_nhwc(x_nhwc, coord).reshape(M, 3)

    outs = []
    for _ in range(N_FORWARD_TIMES):
        packed = jnp.concatenate([base, rgb, zpad], axis=1)           # (M, 128) lane-dense
        out = pallas_mlp2(packed, w1, b1, w2, b2)                     # (M, 3)
        outs.append(out.reshape(B, N, 3))
        rgb = out                                                     # feed back prediction
    return outs


# ----------------------------------------------------------------------------
if __name__ == "__main__":
    key = jax.random.PRNGKey(0)
    k_inp, k_coord, k_par = jax.random.split(key, 3)

    B, H, W, N = 2, 16, 16, 64
    inp = jax.random.normal(k_inp, (B, 3, H, W), jnp.float32)            # NCHW
    coord = jax.random.uniform(k_coord, (B, N, 2), jnp.float32,
                               minval=-1.0, maxval=1.0)
    params = init_params(k_par)

    fwd = jax.jit(rs_super_forward)
    outs = fwd(params, inp, coord)
    outs = [jax.block_until_ready(o) for o in outs]
    assert all(o.shape == (B, N, 3) for o in outs)
    assert all(bool(jnp.all(jnp.isfinite(o))) for o in outs)
    print("KERNEL_OK")
</pallas_src>

<mosaic_0001>
module attributes {stable_mosaic.version = 11 : i64} {
  func.func @_mlp2_kernel(%arg0: i32, %arg1: memref<256x27xf32, #tpu.memory_space<vmem>>, %arg2: memref<27x32xf32, #tpu.memory_space<vmem>>, %arg3: memref<1x32xf32, #tpu.memory_space<vmem>>, %arg4: memref<32x32xf32, #tpu.memory_space<vmem>>, %arg5: memref<1x32xf32, #tpu.memory_space<vmem>>, %arg6: memref<256x32xf32, #tpu.memory_space<vmem>>) attributes {dimension_semantics = [#tpu.dimension_semantics<parallel>], iteration_bounds = array<i64: 2>, scalar_prefetch = 0 : i64, scratch_operands = 0 : i64, tpu.core_type = #tpu.core_type<tc>, window_params = [{transform_indices = @transform_0, window_bounds = array<i64: 256, 27>}, {pipeline_mode = #tpu.pipeline_mode<synchronous>, transform_indices = @transform_1, window_bounds = array<i64: 27, 32>}, {pipeline_mode = #tpu.pipeline_mode<synchronous>, transform_indices = @transform_2, window_bounds = array<i64: 1, 32>}, {pipeline_mode = #tpu.pipeline_mode<synchronous>, transform_indices = @transform_3, window_bounds = array<i64: 32, 32>}, {pipeline_mode = #tpu.pipeline_mode<synchronous>, transform_indices = @transform_4, window_bounds = array<i64: 1, 32>}, {transform_indices = @transform_5, window_bounds = array<i64: 256, 32>}]} {
    %c0 = arith.constant 0 : index
    %c0_0 = arith.constant 0 : index
    %0 = vector.load %arg1[%c0, %c0_0] : memref<256x27xf32, #tpu.memory_space<vmem>>, vector<256x27xf32>
    %c0_1 = arith.constant 0 : index
    %c0_2 = arith.constant 0 : index
    %1 = vector.load %arg2[%c0_1, %c0_2] : memref<27x32xf32, #tpu.memory_space<vmem>>, vector<27x32xf32>
    %cst = arith.constant dense<0.000000e+00> : vector<256x32xf32>
    %2 = tpu.matmul %0, %1, %cst {dimension_numbers = #tpu.dot_dimension_numbers<[1], [0], [0], [1], [0, 0, 1, 1], [], []>} : vector<256x27xf32>, vector<27x32xf32>, vector<256x32xf32> -> vector<256x32xf32>
    %c0_3 = arith.constant 0 : index
    %c0_4 = arith.constant 0 : index
    %3 = vector.load %arg3[%c0_3, %c0_4] : memref<1x32xf32, #tpu.memory_space<vmem>>, vector<1x32xf32>
    %4 = vector.broadcast %3 : vector<1x32xf32> to vector<256x32xf32>
    %5 = arith.addf %2, %4 : vector<256x32xf32>
    %cst_5 = arith.constant 0.000000e+00 : f32
    %6 = vector.broadcast %cst_5 : f32 to vector<256x32xf32>
    %7 = arith.maximumf %5, %6 : vector<256x32xf32>
    %c0_6 = arith.constant 0 : index
    %c0_7 = arith.constant 0 : index
    %8 = vector.load %arg4[%c0_6, %c0_7] : memref<32x32xf32, #tpu.memory_space<vmem>>, vector<32x32xf32>
    %cst_8 = arith.constant dense<0.000000e+00> : vector<256x32xf32>
    %9 = tpu.matmul %7, %8, %cst_8 {dimension_numbers = #tpu.dot_dimension_numbers<[1], [0], [0], [1], [0, 0, 1, 1], [], []>} : vector<256x32xf32>, vector<32x32xf32>, vector<256x32xf32> -> vector<256x32xf32>
    %c0_9 = arith.constant 0 : index
    %c0_10 = arith.constant 0 : index
    %10 = vector.load %arg5[%c0_9, %c0_10] : memref<1x32xf32, #tpu.memory_space<vmem>>, vector<1x32xf32>
    %11 = vector.broadcast %10 : vector<1x32xf32> to vector<256x32xf32>
    %12 = arith.addf %9, %11 : vector<256x32xf32>
    %c0_11 = arith.constant 0 : index
    %c0_12 = arith.constant 0 : index
    %13 = vector.load %arg6[%c0_11, %c0_12] : memref<256x32xf32, #tpu.memory_space<vmem>>, vector<256x32xf32>
    tpu.vector_store %arg6[%c0_11, %c0_12], %12 {strides = array<i32>} : memref<256x32xf32, #tpu.memory_space<vmem>>, vector<256x32xf32>,
    return
  }
  func.func @transform_0(%arg0: i32) -> (i32, i32) {
    %c0_i32 = arith.constant 0 : i32
    %c0_i32_0 = arith.constant 0 : i32
    return %arg0, %c0_i32 : i32, i32
  }
  func.func @transform_1(%arg0: i32) -> (i32, i32) {
    %c0_i32 = arith.constant 0 : i32
    %c0_i32_0 = arith.constant 0 : i32
    %c0_i32_1 = arith.constant 0 : i32
    return %c0_i32, %c0_i32_0 : i32, i32
  }
  func.func @transform_2(%arg0: i32) -> (i32, i32) {
    %c0_i32 = arith.constant 0 : i32
    %c0_i32_0 = arith.constant 0 : i32
    %c0_i32_1 = arith.constant 0 : i32
    return %c0_i32, %c0_i32_0 : i32, i32
  }
  func.func @transform_3(%arg0: i32) -> (i32, i32) {
    %c0_i32 = arith.constant 0 : i32
    %c0_i32_0 = arith.constant 0 : i32
    %c0_i32_1 = arith.constant 0 : i32
    return %c0_i32, %c0_i32_0 : i32, i32
  }
  func.func @transform_4(%arg0: i32) -> (i32, i32) {
    %c0_i32 = arith.constant 0 : i32
    %c0_i32_0 = arith.constant 0 : i32
    %c0_i32_1 = arith.constant 0 : i32
    return %c0_i32, %c0_i32_0 : i32, i32
  }
  func.func @transform_5(%arg0: i32) -> (i32, i32) {
    %c0_i32 = arith.constant 0 : i32
    %c0_i32_0 = arith.constant 0 : i32
    return %arg0, %c0_i32 : i32, i32
  }
}

module attributes {stable_mosaic.version = 11 : i64} {
  func.func @_mlp2_kernel(%arg0: i32, %arg1: memref<64x128xf32, #tpu.memory_space<vmem>>, %arg2: memref<128x64xf32, #tpu.memory_space<vmem>>, %arg3: memref<1x64xf32, #tpu.memory_space<vmem>>, %arg4: memref<64x3xf32, #tpu.memory_space<vmem>>, %arg5: memref<1x3xf32, #tpu.memory_space<vmem>>, %arg6: memref<64x3xf32, #tpu.memory_space<vmem>>) attributes {dimension_semantics = [#tpu.dimension_semantics<parallel>], iteration_bounds = array<i64: 2>, scalar_prefetch = 0 : i64, scratch_operands = 0 : i64, tpu.core_type = #tpu.core_type<tc>, window_params = [{transform_indices = @transform_0, window_bounds = array<i64: 64, 128>}, {pipeline_mode = #tpu.pipeline_mode<synchronous>, transform_indices = @transform_1, window_bounds = array<i64: 128, 64>}, {pipeline_mode = #tpu.pipeline_mode<synchronous>, transform_indices = @transform_2, window_bounds = array<i64: 1, 64>}, {pipeline_mode = #tpu.pipeline_mode<synchronous>, transform_indices = @transform_3, window_bounds = array<i64: 64, 3>}, {pipeline_mode = #tpu.pipeline_mode<synchronous>, transform_indices = @transform_4, window_bounds = array<i64: 1, 3>}, {transform_indices = @transform_5, window_bounds = array<i64: 64, 3>}]} {
    %c0 = arith.constant 0 : index
    %c0_0 = arith.constant 0 : index
    %0 = vector.load %arg1[%c0, %c0_0] : memref<64x128xf32, #tpu.memory_space<vmem>>, vector<64x128xf32>
    %c0_1 = arith.constant 0 : index
    %c0_2 = arith.constant 0 : index
    %1 = vector.load %arg2[%c0_1, %c0_2] : memref<128x64xf32, #tpu.memory_space<vmem>>, vector<128x64xf32>
    %cst = arith.constant dense<0.000000e+00> : vector<64x64xf32>
    %2 = tpu.matmul %0, %1, %cst {dimension_numbers = #tpu.dot_dimension_numbers<[1], [0], [0], [1], [0, 0, 1, 1], [], []>} : vector<64x128xf32>, vector<128x64xf32>, vector<64x64xf32> -> vector<64x64xf32>
    %c0_3 = arith.constant 0 : index
    %c0_4 = arith.constant 0 : index
    %3 = vector.load %arg3[%c0_3, %c0_4] : memref<1x64xf32, #tpu.memory_space<vmem>>, vector<1x64xf32>
    %4 = vector.broadcast %3 : vector<1x64xf32> to vector<64x64xf32>
    %5 = arith.addf %2, %4 : vector<64x64xf32>
    %cst_5 = arith.constant 0.000000e+00 : f32
    %6 = vector.broadcast %cst_5 : f32 to vector<64x64xf32>
    %7 = arith.maximumf %5, %6 : vector<64x64xf32>
    %c0_6 = arith.constant 0 : index
    %c0_7 = arith.constant 0 : index
    %8 = vector.load %arg4[%c0_6, %c0_7] : memref<64x3xf32, #tpu.memory_space<vmem>>, vector<64x3xf32>
    %cst_8 = arith.constant dense<0.000000e+00> : vector<64x3xf32>
    %9 = tpu.matmul %7, %8, %cst_8 {dimension_numbers = #tpu.dot_dimension_numbers<[1], [0], [0], [1], [0, 0, 1, 1], [], []>} : vector<64x64xf32>, vector<64x3xf32>, vector<64x3xf32> -> vector<64x3xf32>
    %c0_9 = arith.constant 0 : index
    %c0_10 = arith.constant 0 : index
    %10 = vector.load %arg5[%c0_9, %c0_10] : memref<1x3xf32, #tpu.memory_space<vmem>>, vector<1x3xf32>
    %11 = vector.broadcast %10 : vector<1x3xf32> to vector<64x3xf32>
    %12 = arith.addf %9, %11 : vector<64x3xf32>
    %c0_11 = arith.constant 0 : index
    %c0_12 = arith.constant 0 : index
    %13 = vector.load %arg6[%c0_11, %c0_12] : memref<64x3xf32, #tpu.memory_space<vmem>>, vector<64x3xf32>
    tpu.vector_store %arg6[%c0_11, %c0_12], %12 {strides = array<i32>} : memref<64x3xf32, #tpu.memory_space<vmem>>, vector<64x3xf32>,
    return
  }
  func.func @transform_0(%arg0: i32) -> (i32, i32) {
    %c0_i32 = arith.constant 0 : i32
    %c0_i32_0 = arith.constant 0 : i32
    return %arg0, %c0_i32 : i32, i32
  }
  func.func @transform_1(%arg0: i32) -> (i32, i32) {
    %c0_i32 = arith.constant 0 : i32
    %c0_i32_0 = arith.constant 0 : i32
    %c0_i32_1 = arith.constant 0 : i32
    return %c0_i32, %c0_i32_0 : i32, i32
  }
  func.func @transform_2(%arg0: i32) -> (i32, i32) {
    %c0_i32 = arith.constant 0 : i32
    %c0_i32_0 = arith.constant 0 : i32
    %c0_i32_1 = arith.constant 0 : i32
    return %c0_i32, %c0_i32_0 : i32, i32
  }
  func.func @transform_3(%arg0: i32) -> (i32, i32) {
    %c0_i32 = arith.constant 0 : i32
    %c0_i32_0 = arith.constant 0 : i32
    %c0_i32_1 = arith.constant 0 : i32
    return %c0_i32, %c0_i32_0 : i32, i32
  }
  func.func @transform_4(%arg0: i32) -> (i32, i32) {
    %c0_i32 = arith.constant 0 : i32
    %c0_i32_0 = arith.constant 0 : i32
    %c0_i32_1 = arith.constant 0 : i32
    return %c0_i32, %c0_i32_0 : i32, i32
  }
  func.func @transform_5(%arg0: i32) -> (i32, i32) {
    %c0_i32 = arith.constant 0 : i32
    %c0_i32_0 = arith.constant 0 : i32
    return %arg0, %c0_i32 : i32, i32
  }
}

</mosaic_0001>

<bundles_post_ra>
// kernel: rs_super_forward.3
= control target key start
LH: loop header
LB: loop body
LE: loop exit
PB: predicated region body
PF: predicated region fallthrough
CT: control target
= control target key end

     0   :  { %s1378_s18 = smov 0   ;;  %s1664_s0 = inlined_call_operand.vmem [shape: f32[512,27], index: 0, kind: input, shape index: {}]   ;;  %s1665_s1 = inlined_call_operand.vmem [shape: f32[27,32], index: 1, kind: input, shape index: {}]   ;;  %s1666_s2 = inlined_call_operand.vmem [shape: f32[1,32], index: 2, kind: input, shape index: {}]   ;;  %s1667_s3 = inlined_call_operand.vmem [shape: f32[32,32], index: 3, kind: input, shape index: {}]   ;;  %s1668_s4 = inlined_call_operand.vmem [shape: f32[1,32], index: 4, kind: input, shape index: {}]   ;;  %s1669_s5 = inlined_call_operand.vmem [shape: f32[512,32], index: 5, kind: output, shape index: {}]  }
   0x1 LB: > { %s1050_s19 = sadd.s32 4294967295, %s1345_s18   ;;  %p1054_p0 = scmp.ge.s32.totalorder %s1345_s18, 1  ;;  %s1345_s18 = sphi %s1378_s18, %s15_s18  }
   0x2   : > { %p188_p1 = scmp.lt.s32.totalorder %s1345_s18, 3 }
   0x4   : > { %p189_p2 = pnand %p1054_p0, %p188_p1 }
   0x5   : > { %v260_v0 = vld [vmem:[%s1665_s1] sm:$0xff] (!%p189_p2)  ;;  %v261_v1 = vld [vmem:[%s1665_s1 + $0x8] sm:$0xff] (!%p189_p2)  ;;  %v262_v2 = vld [vmem:[%s1665_s1 + $0x10] sm:$0xff] (!%p189_p2)  ;;  %vm368_vm0 = vcmask (!%p189_p2), 1042432   ;;  %s1055_s26 = sshll.u32 (!%p189_p2), %s1050_s19, 5  ;;  %vm1347_vm1 = vmmov (!%p189_p2), 1  }
   0x6   : > { %192 = sbr.rel (%p189_p2) target bundleno = 512 (0x200), region = 40  ;;  %v1312_v3 = vpack.c.bf16 (!%p189_p2), %v261_v1, %v260_v0  ;;  %v263_v4 = vld [vmem:[%s1665_s1 + $0x18] sm:$0x7] (!%p189_p2)  ;;  %p217_p3 = scmp.lt.s32.totalorder (!%p189_p2), %s1055_s26, 63  ;;  %v629_v5 = vld [vmem:[%s1667_s3] sm:$0xff] (!%p189_p2)  ;;  %vm1317_vm2 = vmpackc.low (!%p189_p2), %vm368_vm0, %vm1347_vm1  ;;  %vm271_vm3 = vcmask (!%p189_p2), 220160  }
   0x7   : > { %v1316_v6 = vpack.c.bf16 (!%p189_p2), %v263_v4, %v262_v2  ;;  %v630_v7 = vld [vmem:[%s1667_s3 + $0x8] sm:$0xff] (!%p189_p2)  ;;  %v631_v41 = vld [vmem:[%s1667_s3 + $0x10] sm:$0xff] (!%p189_p2)  ;;  %v632_v42 = vld [vmem:[%s1667_s3 + $0x18] sm:$0xff] (!%p189_p2)  ;;  %vm640_vm4 = vcmask (!%p189_p2), 261120  }
   0x8   : > { %1313 = vmatprep.subr.bf16.mxu0 (!%p189_p2), %v1312_v3  ;;  %v1322_v8 = vpack.c.bf16 (!%p189_p2), %v630_v7, %v629_v5  ;;  %v1326_v43 = vpack.c.bf16 (!%p189_p2), %v632_v42, %v631_v41  ;;  %v1487_v44 = vld [vmem:[%s1666_s2] ss:$0 sm:$0xff] (!%p189_p2) }
   0x9   : > { %1315 = vmatpush3.bf16.msra.mxu0 (!%p189_p2), %v1312_v3 }
   0xa   : > { %1318 = vmatprep.subr.msk.bf16.mxu0 (!%p189_p2), %vm1317_vm2, %v1316_v6  ;;  %1323 = vmatprep.subr.bf16.mxu1 (!%p189_p2), %v1322_v8 }
   0xb   : > { %1325 = vmatpush3.bf16.msra.mxu1 (!%p189_p2), %v1322_v8 }
   0xc   : > { %1327 = vmatprep.subr.bf16.mxu1 (!%p189_p2), %v1326_v43 }
   0xd   : > { %s1671_s26 = smov (!%p217_p3, %s1055_s26), 63  ;;  %1321 = vmatpush3.bf16.msk.msra.mxu0 %vm1317_vm2, %v1316_v6 }
   0xe   : > { %s1056_s8 = sshll.u32 %s1671_s26, 3 }
   0xf   : > { %s1412_s11 = scalar_lea.vmem %s1664_s0, %s1056_s8  ;;  %1329 = vmatpush3.bf16.msra.mxu1 %v1326_v43  ;;  %s1563_s23 = scalar_lea.vmem %s1669_s5, %s1056_s8 }
  0x10   : > { %v228_v9 = vld [vmem:[%s1412_s11] sm:$0xff]  ;;  %v229_v10 = vld [vmem:[%s1412_s11 + $0x8] sm:$0xff]  ;;  %v230_v11 = vld [vmem:[%s1412_s11 + $0x10] sm:$0xff] }
  0x11   : > { %1208 = vmatprep.mubr.msk.f32.mxu0 %vm271_vm3, %v228_v9  ;;  %v231_v12 = vld [vmem:[%s1412_s11 + $0x18] sm:$0xff]  ;;  %v232_v13 = vld [vmem:[%s1412_s11 + $0x20] sm:$0xff]  ;;  %v233_v14 = vld [vmem:[%s1412_s11 + $0x28] sm:$0xff] }
  0x12   : > { %1209 = vmatmul.mubr.msk.f32.vlgmr.msra.gmra.mrb[0].mxu0 %vm271_vm3, %v229_v10  ;;  %v234_v15 = vld [vmem:[%s1412_s11 + $0x30] sm:$0xff]  ;;  %v235_v16 = vld [vmem:[%s1412_s11 + $0x38] sm:$0xff]  ;;  %v236_v17 = vld [vmem:[%s1412_s11 + $0x40] sm:$0xff] }
  0x13   : > { %1211 = vmatprep.mubr.msk.f32.mxu0 %vm271_vm3, %v230_v11  ;;  %v237_v18 = vld [vmem:[%s1412_s11 + $0x48] sm:$0xff]  ;;  %v238_v19 = vld [vmem:[%s1412_s11 + $0x50] sm:$0xff]  ;;  %v239_v20 = vld [vmem:[%s1412_s11 + $0x58] sm:$0xff] }
  0x14   : > { %v240_v21 = vld [vmem:[%s1412_s11 + $0x60] sm:$0xff]  ;;  %v241_v22 = vld [vmem:[%s1412_s11 + $0x68] sm:$0xff]  ;;  %v242_v23 = vld [vmem:[%s1412_s11 + $0x70] sm:$0xff] }
  0x15   : > { %v243_v24 = vld [vmem:[%s1412_s11 + $0x78] sm:$0xff]  ;;  %v244_v25 = vld [vmem:[%s1412_s11 + $0x80] sm:$0xff]  ;;  %v245_v26 = vld [vmem:[%s1412_s11 + $0x88] sm:$0xff] }
  0x16   : > { %1212 = vmatmul.mubr.msk.f32.gmra.mrb[2].mxu0 %vm271_vm3, %v231_v12  ;;  %v246_v27 = vld [vmem:[%s1412_s11 + $0x90] sm:$0xff]  ;;  %v247_v28 = vld [vmem:[%s1412_s11 + $0x98] sm:$0xff]  ;;  %v248_v29 = vld [vmem:[%s1412_s11 + $0xa0] sm:$0xff] }
  0x17   : > { %1214 = vmatprep.mubr.msk.f32.mxu0 %vm271_vm3, %v232_v13  ;;  %v249_v30 = vld [vmem:[%s1412_s11 + $0xa8] sm:$0xff]  ;;  %v250_v31 = vld [vmem:[%s1412_s11 + $0xb0] sm:$0xff]  ;;  %v251_v32 = vld [vmem:[%s1412_s11 + $0xb8] sm:$0xff] }
  0x18   : > { %v252_v33 = vld [vmem:[%s1412_s11 + $0xc0] sm:$0xff]  ;;  %v253_v34 = vld [vmem:[%s1412_s11 + $0xc8] sm:$0xff]  ;;  %v254_v35 = vld [vmem:[%s1412_s11 + $0xd0] sm:$0xff] }
  0x19   : > { %v255_v36 = vld [vmem:[%s1412_s11 + $0xd8] sm:$0xff]  ;;  %v256_v37 = vld [vmem:[%s1412_s11 + $0xe0] sm:$0xff]  ;;  %v257_v38 = vld [vmem:[%s1412_s11 + $0xe8] sm:$0xff] }
  0x1a   : > { %1215 = vmatmul.mubr.msk.f32.gmra.mrb[4].mxu0 %vm271_vm3, %v233_v14  ;;  %v258_v39 = vld [vmem:[%s1412_s11 + $0xf0] sm:$0xff]  ;;  %v259_v40 = vld [vmem:[%s1412_s11 + $0xf8] sm:$0xff] }
  0x1b   : > { %1217 = vmatprep.mubr.msk.f32.mxu0 %vm271_vm3, %v234_v15 }
  0x1e   : > { %1218 = vmatmul.mubr.msk.f32.gmra.mrb[6].mxu0 %vm271_vm3, %v235_v16 }
  0x1f   : > { %1220 = vmatprep.mubr.msk.f32.mxu0 %vm271_vm3, %v236_v17 }
  0x22   : > { %1221 = vmatmul.mubr.msk.f32.gmra.mrb[8].mxu0 %vm271_vm3, %v237_v18 }
  0x23   : > { %1223 = vmatprep.mubr.msk.f32.mxu0 %vm271_vm3, %v238_v19 }
  0x26   : > { %1224 = vmatmul.mubr.msk.f32.gmra.mrb[10].mxu0 %vm271_vm3, %v239_v20 }
  0x27   : > { %1226 = vmatprep.mubr.msk.f32.mxu0 %vm271_vm3, %v240_v21 }
  0x2a   : > { %1227 = vmatmul.mubr.msk.f32.gmra.mrb[12].mxu0 %vm271_vm3, %v241_v22 }
  0x2b   : > { %1229 = vmatprep.mubr.msk.f32.mxu0 %vm271_vm3, %v242_v23 }
  0x2e   : > { %1230 = vmatmul.mubr.msk.f32.gmra.mrb[14].mxu0 %vm271_vm3, %v243_v24 }
  0x2f   : > { %1232 = vmatprep.mubr.msk.f32.mxu0 %vm271_vm3, %v244_v25 }
  0x32   : > { %1233 = vmatmul.mubr.msk.f32.gmra.mrb[16].mxu0 %vm271_vm3, %v245_v26 }
  0x33   : > { %1235 = vmatprep.mubr.msk.f32.mxu0 %vm271_vm3, %v246_v27 }
  0x36   : > { %1236 = vmatmul.mubr.msk.f32.gmra.mrb[18].mxu0 %vm271_vm3, %v247_v28 }
  0x37   : > { %1238 = vmatprep.mubr.msk.f32.mxu0 %vm271_vm3, %v248_v29 }
  0x3a   : > { %1239 = vmatmul.mubr.msk.f32.gmra.mrb[20].mxu0 %vm271_vm3, %v249_v30 }
  0x3b   : > { %1241 = vmatprep.mubr.msk.f32.mxu0 %vm271_vm3, %v250_v31 }
  0x3e   : > { %1242 = vmatmul.mubr.msk.f32.gmra.mrb[22].mxu0 %vm271_vm3, %v251_v32 }
  0x3f   : > { %1244 = vmatprep.mubr.msk.f32.mxu0 %vm271_vm3, %v252_v33 }
  0x42   : > { %1245 = vmatmul.mubr.msk.f32.gmra.mrb[24].mxu0 %vm271_vm3, %v253_v34 }
  0x43   : > { %1247 = vmatprep.mubr.msk.f32.mxu0 %vm271_vm3, %v254_v35 }
  0x46   : > { %1248 = vmatmul.mubr.msk.f32.gmra.mrb[26].mxu0 %vm271_vm3, %v255_v36 }
  0x47   : > { %1250 = vmatprep.mubr.msk.f32.mxu0 %vm271_vm3, %v256_v37 }
  0x4a   : > { %1251 = vmatmul.mubr.msk.f32.gmra.mrb[28].mxu0 %vm271_vm3, %v257_v38 }
  0x4b   : > { %1253 = vmatprep.mubr.msk.f32.mxu0 %vm271_vm3, %v258_v39 }
  0x4e   : > { %1254 = vmatmul.mubr.msk.f32.gmra.mrb[30].mxu0 %vm271_vm3, %v259_v40 }
  0xe5   : > { %v1210_v45 = vpop.f32.mrb[0].mxu0 }
  0xe6   : > { %v444_v46 = vadd.f32 %v1210_v45, %v1487_v44  ;;  %v438_v47 = vpop.f32.mrb[1].mxu0 }
  0xe7   : > { %v439_v48 = vadd.f32 %v1487_v44, %v438_v47 }
  0xe8   : > { %v598_v51 = vmax.f32 %v444_v46, 0.0 }
  0xe9   : > { %v597_v49 = vmax.f32 %v439_v48, 0.0  ;;  %v1213_v50 = vpop.f32.mrb[2].mxu0 }
  0xea   : > { %v454_v52 = vadd.f32 %v1213_v50, %v1487_v44  ;;  %v448_v53 = vpop.f32.mrb[3].mxu0 }
  0xeb   : > { %v449_v54 = vadd.f32 %v1487_v44, %v448_v53  ;;  %1264 = vmatprep.mubr.msk.f32.mxu1 %vm640_vm4, %v597_v49 }
  0xec   : > { %1265 = vmatmul.mubr.msk.f32.vlgmr.msra.gmra.mrb[0].mxu1 %vm640_vm4, %v598_v51  ;;  %v600_v57 = vmax.f32 %v454_v52, 0.0 }
  0xed   : > { %v599_v55 = vmax.f32 %v449_v54, 0.0  ;;  %v1216_v56 = vpop.f32.mrb[4].mxu0 }
  0xee   : > { %v464_v58 = vadd.f32 %v1216_v56, %v1487_v44  ;;  %v458_v59 = vpop.f32.mrb[5].mxu0 }
  0xef   : > { %v459_v60 = vadd.f32 %v1487_v44, %v458_v59  ;;  %1267 = vmatprep.mubr.msk.f32.mxu1 %vm640_vm4, %v599_v55 }
  0xf0   : > { %1268 = vmatmul.mubr.msk.f32.gmra.mrb[2].mxu1 %vm640_vm4, %v600_v57  ;;  %v602_v63 = vmax.f32 %v464_v58, 0.0 }
  0xf1   : > { %v601_v61 = vmax.f32 %v459_v60, 0.0  ;;  %v1219_v62 = vpop.f32.mrb[6].mxu0 }
  0xf2   : > { %v474_v0 = vadd.f32 %v1219_v62, %v1487_v44  ;;  %v468_v1 = vpop.f32.mrb[7].mxu0 }
  0xf3   : > { %v469_v2 = vadd.f32 %v1487_v44, %v468_v1  ;;  %1270 = vmatprep.mubr.msk.f32.mxu1 %vm640_vm4, %v601_v61 }
  0xf4   : > { %1271 = vmatmul.mubr.msk.f32.gmra.mrb[4].mxu1 %vm640_vm4, %v602_v63  ;;  %v604_v5 = vmax.f32 %v474_v0, 0.0 }
  0xf5   : > { %v603_v3 = vmax.f32 %v469_v2, 0.0  ;;  %v1222_v4 = vpop.f32.mrb[8].mxu0 }
  0xf6   : > { %v484_v6 = vadd.f32 %v1222_v4, %v1487_v44  ;;  %v478_v7 = vpop.f32.mrb[9].mxu0 }
  0xf7   : > { %v479_v8 = vadd.f32 %v1487_v44, %v478_v7  ;;  %1273 = vmatprep.mubr.msk.f32.mxu1 %vm640_vm4, %v603_v3 }
  0xf8   : > { %1274 = vmatmul.mubr.msk.f32.gmra.mrb[6].mxu1 %vm640_vm4, %v604_v5  ;;  %v606_v11 = vmax.f32 %v484_v6, 0.0 }
  0xf9   : > { %v605_v9 = vmax.f32 %v479_v8, 0.0  ;;  %v1225_v10 = vpop.f32.mrb[10].mxu0 }
  0xfa   : > { %v494_v12 = vadd.f32 %v1225_v10, %v1487_v44  ;;  %v488_v13 = vpop.f32.mrb[11].mxu0 }
  0xfb   : > { %v489_v14 = vadd.f32 %v1487_v44, %v488_v13  ;;  %1276 = vmatprep.mubr.msk.f32.mxu1 %vm640_vm4, %v605_v9 }
  0xfc   : > { %1277 = vmatmul.mubr.msk.f32.gmra.mrb[8].mxu1 %vm640_vm4, %v606_v11  ;;  %v608_v17 = vmax.f32 %v494_v12, 0.0 }
  0xfd   : > { %v607_v15 = vmax.f32 %v489_v14, 0.0  ;;  %v1228_v16 = vpop.f32.mrb[12].mxu0  ;;  %v1556_v14 = vld [vmem:[%s1668_s4] ss:$0 sm:$0xff] }
  0xfe   : > { %v504_v18 = vadd.f32 %v1228_v16, %v1487_v44  ;;  %v498_v19 = vpop.f32.mrb[13].mxu0 }
  0xff   : > { %v499_v20 = vadd.f32 %v1487_v44, %v498_v19  ;;  %1279 = vmatprep.mubr.msk.f32.mxu1 %vm640_vm4, %v607_v15 }
 0x100   : > { %1280 = vmatmul.mubr.msk.f32.gmra.mrb[10].mxu1 %vm640_vm4, %v608_v17  ;;  %v610_v23 = vmax.f32 %v504_v18, 0.0 }
 0x101   : > { %v609_v21 = vmax.f32 %v499_v20, 0.0  ;;  %v1231_v22 = vpop.f32.mrb[14].mxu0 }
 0x102   : > { %v514_v24 = vadd.f32 %v1231_v22, %v1487_v44  ;;  %v508_v25 = vpop.f32.mrb[15].mxu0 }
 0x103   : > { %v509_v26 = vadd.f32 %v1487_v44, %v508_v25  ;;  %1282 = vmatprep.mubr.msk.f32.mxu1 %vm640_vm4, %v609_v21 }
 0x104   : > { %1283 = vmatmul.mubr.msk.f32.gmra.mrb[12].mxu1 %vm640_vm4, %v610_v23  ;;  %v612_v29 = vmax.f32 %v514_v24, 0.0 }
 0x105   : > { %v611_v27 = vmax.f32 %v509_v26, 0.0  ;;  %v1234_v28 = vpop.f32.mrb[16].mxu0 }
 0x106   : > { %v524_v30 = vadd.f32 %v1234_v28, %v1487_v44  ;;  %v518_v31 = vpop.f32.mrb[17].mxu0 }
 0x107   : > { %v519_v32 = vadd.f32 %v1487_v44, %v518_v31  ;;  %1285 = vmatprep.mubr.msk.f32.mxu1 %vm640_vm4, %v611_v27 }
 0x108   : > { %1286 = vmatmul.mubr.msk.f32.gmra.mrb[14].mxu1 %vm640_vm4, %v612_v29  ;;  %v614_v35 = vmax.f32 %v524_v30, 0.0 }
 0x109   : > { %v613_v33 = vmax.f32 %v519_v32, 0.0  ;;  %v1237_v34 = vpop.f32.mrb[18].mxu0 }
 0x10a   : > { %v534_v36 = vadd.f32 %v1237_v34, %v1487_v44  ;;  %v528_v37 = vpop.f32.mrb[19].mxu0 }
 0x10b   : > { %v529_v38 = vadd.f32 %v1487_v44, %v528_v37  ;;  %1288 = vmatprep.mubr.msk.f32.mxu1 %vm640_vm4, %v613_v33 }
 0x10c   : > { %1289 = vmatmul.mubr.msk.f32.gmra.mrb[16].mxu1 %vm640_vm4, %v614_v35  ;;  %v616_v41 = vmax.f32 %v534_v36, 0.0 }
 0x10d   : > { %v615_v39 = vmax.f32 %v529_v38, 0.0  ;;  %v1240_v40 = vpop.f32.mrb[20].mxu0 }
 0x10e   : > { %v544_v42 = vadd.f32 %v1240_v40, %v1487_v44  ;;  %v538_v43 = vpop.f32.mrb[21].mxu0 }
 0x10f   : > { %v539_v45 = vadd.f32 %v1487_v44, %v538_v43  ;;  %1291 = vmatprep.mubr.msk.f32.mxu1 %vm640_vm4, %v615_v39 }
 0x110   : > { %1292 = vmatmul.mubr.msk.f32.gmra.mrb[18].mxu1 %vm640_vm4, %v616_v41  ;;  %v618_v48 = vmax.f32 %v544_v42, 0.0 }
 0x111   : > { %v617_v46 = vmax.f32 %v539_v45, 0.0  ;;  %v1243_v47 = vpop.f32.mrb[22].mxu0 }
 0x112   : > { %v554_v49 = vadd.f32 %v1243_v47, %v1487_v44  ;;  %v548_v50 = vpop.f32.mrb[23].mxu0 }
 0x113   : > { %v549_v51 = vadd.f32 %v1487_v44, %v548_v50  ;;  %1294 = vmatprep.mubr.msk.f32.mxu1 %vm640_vm4, %v617_v46 }
 0x114   : > { %1295 = vmatmul.mubr.msk.f32.gmra.mrb[20].mxu1 %vm640_vm4, %v618_v48  ;;  %v620_v54 = vmax.f32 %v554_v49, 0.0 }
 0x115   : > { %v619_v52 = vmax.f32 %v549_v51, 0.0  ;;  %v1246_v53 = vpop.f32.mrb[24].mxu0 }
 0x116   : > { %v564_v55 = vadd.f32 %v1246_v53, %v1487_v44  ;;  %v558_v56 = vpop.f32.mrb[25].mxu0 }
 0x117   : > { %v559_v57 = vadd.f32 %v1487_v44, %v558_v56  ;;  %1297 = vmatprep.mubr.msk.f32.mxu1 %vm640_vm4, %v619_v52 }
 0x118   : > { %1298 = vmatmul.mubr.msk.f32.gmra.mrb[22].mxu1 %vm640_vm4, %v620_v54  ;;  %v622_v60 = vmax.f32 %v564_v55, 0.0 }
 0x119   : > { %v621_v58 = vmax.f32 %v559_v57, 0.0  ;;  %v1249_v59 = vpop.f32.mrb[26].mxu0 }
 0x11a   : > { %v574_v61 = vadd.f32 %v1249_v59, %v1487_v44  ;;  %v568_v62 = vpop.f32.mrb[27].mxu0 }
 0x11b   : > { %v569_v63 = vadd.f32 %v1487_v44, %v568_v62  ;;  %1300 = vmatprep.mubr.msk.f32.mxu1 %vm640_vm4, %v621_v58 }
 0x11c   : > { %1301 = vmatmul.mubr.msk.f32.gmra.mrb[24].mxu1 %vm640_vm4, %v622_v60  ;;  %v624_v2 = vmax.f32 %v574_v61, 0.0 }
 0x11d   : > { %v623_v0 = vmax.f32 %v569_v63, 0.0  ;;  %v1252_v1 = vpop.f32.mrb[28].mxu0 }
 0x11e   : > { %v584_v3 = vadd.f32 %v1252_v1, %v1487_v44  ;;  %v578_v4 = vpop.f32.mrb[29].mxu0 }
 0x11f   : > { %v579_v5 = vadd.f32 %v1487_v44, %v578_v4  ;;  %1303 = vmatprep.mubr.msk.f32.mxu1 %vm640_vm4, %v623_v0 }
 0x120   : > { %1304 = vmatmul.mubr.msk.f32.gmra.mrb[26].mxu1 %vm640_vm4, %v624_v2  ;;  %v626_v8 = vmax.f32 %v584_v3, 0.0 }
 0x121   : > { %v625_v6 = vmax.f32 %v579_v5, 0.0  ;;  %v1255_v7 = vpop.f32.mrb[30].mxu0 }
 0x122   : > { %v594_v9 = vadd.f32 %v1255_v7, %v1487_v44  ;;  %v588_v10 = vpop.f32.mrb[31].mxu0 }
 0x123   : > { %v589_v11 = vadd.f32 %v1487_v44, %v588_v10  ;;  %1306 = vmatprep.mubr.msk.f32.mxu1 %vm640_vm4, %v625_v6 }
 0x124   : > { %1307 = vmatmul.mubr.msk.f32.gmra.mrb[28].mxu1 %vm640_vm4, %v626_v8  ;;  %v628_v13 = vmax.f32 %v594_v9, 0.0 }
 0x125   : > { %v627_v12 = vmax.f32 %v589_v11, 0.0 }
 0x127   : > { %1309 = vmatprep.mubr.msk.f32.mxu1 %vm640_vm4, %v627_v12 }
 0x128   : > { %1310 = vmatmul.mubr.msk.f32.gmra.mrb[30].mxu1 %vm640_vm4, %v628_v13 }
 0x1bf   : > { %v1266_v44 = vpop.f32.mrb[0].mxu1 }
 0x1c0   : > { %v809_v15 = vadd.f32 %v1266_v44, %v1556_v14  ;;  %v803_v16 = vpop.f32.mrb[1].mxu1 }
 0x1c1   : > { %v804_v17 = vadd.f32 %v1556_v14, %v803_v16 }
 0x1c2   : > { %963 = vst.msk [vmem:[%s1563_s23 + $0x8] sm:$0xff] %vm640_vm4, %v809_v15 }
 0x1c3   : > { %962 = vst.msk [vmem:[%s1563_s23] sm:$0xff] %vm640_vm4, %v804_v17  ;;  %v1269_v18 = vpop.f32.mrb[2].mxu1 }
 0x1c4   : > { %v819_v19 = vadd.f32 %v1269_v18, %v1556_v14  ;;  %v813_v20 = vpop.f32.mrb[3].mxu1 }
 0x1c5   : > { %v814_v21 = vadd.f32 %v1556_v14, %v813_v20 }
 0x1c6   : > { %965 = vst.msk [vmem:[%s1563_s23 + $0x18] sm:$0xff] %vm640_vm4, %v819_v19 }
 0x1c7   : > { %964 = vst.msk [vmem:[%s1563_s23 + $0x10] sm:$0xff] %vm640_vm4, %v814_v21  ;;  %v1272_v22 = vpop.f32.mrb[4].mxu1 }
 0x1c8   : > { %v829_v23 = vadd.f32 %v1272_v22, %v1556_v14  ;;  %v823_v24 = vpop.f32.mrb[5].mxu1 }
 0x1c9   : > { %v824_v25 = vadd.f32 %v1556_v14, %v823_v24 }
 0x1ca   : > { %967 = vst.msk [vmem:[%s1563_s23 + $0x28] sm:$0xff] %vm640_vm4, %v829_v23 }
 0x1cb   : > { %966 = vst.msk [vmem:[%s1563_s23 + $0x20] sm:$0xff] %vm640_vm4, %v824_v25  ;;  %v1275_v26 = vpop.f32.mrb[6].mxu1 }
 0x1cc   : > { %v839_v27 = vadd.f32 %v1275_v26, %v1556_v14  ;;  %v833_v28 = vpop.f32.mrb[7].mxu1 }
 0x1cd   : > { %v834_v29 = vadd.f32 %v1556_v14, %v833_v28 }
 0x1ce   : > { %969 = vst.msk [vmem:[%s1563_s23 + $0x38] sm:$0xff] %vm640_vm4, %v839_v27 }
 0x1cf   : > { %968 = vst.msk [vmem:[%s1563_s23 + $0x30] sm:$0xff] %vm640_vm4, %v834_v29  ;;  %v1278_v30 = vpop.f32.mrb[8].mxu1 }
 0x1d0   : > { %v849_v31 = vadd.f32 %v1278_v30, %v1556_v14  ;;  %v843_v32 = vpop.f32.mrb[9].mxu1 }
 0x1d1   : > { %v844_v33 = vadd.f32 %v1556_v14, %v843_v32 }
 0x1d2   : > { %971 = vst.msk [vmem:[%s1563_s23 + $0x48] sm:$0xff] %vm640_vm4, %v849_v31 }
 0x1d3   : > { %970 = vst.msk [vmem:[%s1563_s23 + $0x40] sm:$0xff] %vm640_vm4, %v844_v33  ;;  %v1281_v34 = vpop.f32.mrb[10].mxu1 }
 0x1d4   : > { %v859_v35 = vadd.f32 %v1281_v34, %v1556_v14  ;;  %v853_v36 = vpop.f32.mrb[11].mxu1 }
 0x1d5   : > { %v854_v37 = vadd.f32 %v1556_v14, %v853_v36 }
 0x1d6   : > { %973 = vst.msk [vmem:[%s1563_s23 + $0x58] sm:$0xff] %vm640_vm4, %v859_v35 }
 0x1d7   : > { %972 = vst.msk [vmem:[%s1563_s23 + $0x50] sm:$0xff] %vm640_vm4, %v854_v37  ;;  %v1284_v38 = vpop.f32.mrb[12].mxu1 }
 0x1d8   : > { %v869_v39 = vadd.f32 %v1284_v38, %v1556_v14  ;;  %v863_v40 = vpop.f32.mrb[13].mxu1 }
 0x1d9   : > { %v864_v41 = vadd.f32 %v1556_v14, %v863_v40 }
 0x1da   : > { %975 = vst.msk [vmem:[%s1563_s23 + $0x68] sm:$0xff] %vm640_vm4, %v869_v39 }
 0x1db   : > { %974 = vst.msk [vmem:[%s1563_s23 + $0x60] sm:$0xff] %vm640_vm4, %v864_v41  ;;  %v1287_v42 = vpop.f32.mrb[14].mxu1 }
 0x1dc   : > { %v879_v43 = vadd.f32 %v1287_v42, %v1556_v14  ;;  %v873_v45 = vpop.f32.mrb[15].mxu1 }
 0x1dd   : > { %v874_v46 = vadd.f32 %v1556_v14, %v873_v45 }
 0x1de   : > { %977 = vst.msk [vmem:[%s1563_s23 + $0x78] sm:$0xff] %vm640_vm4, %v879_v43 }
 0x1df   : > { %976 = vst.msk [vmem:[%s1563_s23 + $0x70] sm:$0xff] %vm640_vm4, %v874_v46  ;;  %v1290_v47 = vpop.f32.mrb[16].mxu1 }
 0x1e0   : > { %v889_v48 = vadd.f32 %v1290_v47, %v1556_v14  ;;  %v883_v49 = vpop.f32.mrb[17].mxu1 }
 0x1e1   : > { %v884_v50 = vadd.f32 %v1556_v14, %v883_v49 }
 0x1e2   : > { %979 = vst.msk [vmem:[%s1563_s23 + $0x88] sm:$0xff] %vm640_vm4, %v889_v48 }
 0x1e3   : > { %978 = vst.msk [vmem:[%s1563_s23 + $0x80] sm:$0xff] %vm640_vm4, %v884_v50  ;;  %v1293_v51 = vpop.f32.mrb[18].mxu1 }
 0x1e4   : > { %v899_v52 = vadd.f32 %v1293_v51, %v1556_v14  ;;  %v893_v53 = vpop.f32.mrb[19].mxu1 }
 0x1e5   : > { %v894_v54 = vadd.f32 %v1556_v14, %v893_v53 }
 0x1e6   : > { %981 = vst.msk [vmem:[%s1563_s23 + $0x98] sm:$0xff] %vm640_vm4, %v899_v52 }
 0x1e7   : > { %980 = vst.msk [vmem:[%s1563_s23 + $0x90] sm:$0xff] %vm640_vm4, %v894_v54  ;;  %v1296_v55 = vpop.f32.mrb[20].mxu1 }
 0x1e8   : > { %v909_v56 = vadd.f32 %v1296_v55, %v1556_v14  ;;  %v903_v57 = vpop.f32.mrb[21].mxu1 }
 0x1e9   : > { %v904_v58 = vadd.f32 %v1556_v14, %v903_v57 }
 0x1ea   : > { %983 = vst.msk [vmem:[%s1563_s23 + $0xa8] sm:$0xff] %vm640_vm4, %v909_v56 }
 0x1eb   : > { %982 = vst.msk [vmem:[%s1563_s23 + $0xa0] sm:$0xff] %vm640_vm4, %v904_v58  ;;  %v1299_v59 = vpop.f32.mrb[22].mxu1 }
 0x1ec   : > { %v919_v60 = vadd.f32 %v1299_v59, %v1556_v14  ;;  %v913_v61 = vpop.f32.mrb[23].mxu1 }
 0x1ed   : > { %v914_v62 = vadd.f32 %v1556_v14, %v913_v61 }
 0x1ee   : > { %985 = vst.msk [vmem:[%s1563_s23 + $0xb8] sm:$0xff] %vm640_vm4, %v919_v60 }
 0x1ef   : > { %984 = vst.msk [vmem:[%s1563_s23 + $0xb0] sm:$0xff] %vm640_vm4, %v914_v62  ;;  %v1302_v63 = vpop.f32.mrb[24].mxu1 }
 0x1f0   : > { %v929_v0 = vadd.f32 %v1302_v63, %v1556_v14  ;;  %v923_v1 = vpop.f32.mrb[25].mxu1 }
 0x1f1   : > { %v924_v2 = vadd.f32 %v1556_v14, %v923_v1 }
 0x1f2   : > { %987 = vst.msk [vmem:[%s1563_s23 + $0xc8] sm:$0xff] %vm640_vm4, %v929_v0 }
 0x1f3   : > { %986 = vst.msk [vmem:[%s1563_s23 + $0xc0] sm:$0xff] %vm640_vm4, %v924_v2  ;;  %v1305_v3 = vpop.f32.mrb[26].mxu1 }
 0x1f4   : > { %v939_v4 = vadd.f32 %v1305_v3, %v1556_v14  ;;  %v933_v5 = vpop.f32.mrb[27].mxu1 }
 0x1f5   : > { %v934_v6 = vadd.f32 %v1556_v14, %v933_v5 }
 0x1f6   : > { %989 = vst.msk [vmem:[%s1563_s23 + $0xd8] sm:$0xff] %vm640_vm4, %v939_v4 }
 0x1f7   : > { %988 = vst.msk [vmem:[%s1563_s23 + $0xd0] sm:$0xff] %vm640_vm4, %v934_v6  ;;  %v1308_v7 = vpop.f32.mrb[28].mxu1 }
 0x1f8   : > { %v949_v8 = vadd.f32 %v1308_v7, %v1556_v14  ;;  %v943_v9 = vpop.f32.mrb[29].mxu1 }
 0x1f9   : > { %v944_v10 = vadd.f32 %v1556_v14, %v943_v9 }
 0x1fa   : > { %991 = vst.msk [vmem:[%s1563_s23 + $0xe8] sm:$0xff] %vm640_vm4, %v949_v8 }
 0x1fb   : > { %990 = vst.msk [vmem:[%s1563_s23 + $0xe0] sm:$0xff] %vm640_vm4, %v944_v10  ;;  %v1311_v11 = vpop.f32.mrb[30].mxu1 }
 0x1fc   : > { %v959_v12 = vadd.f32 %v1311_v11, %v1556_v14  ;;  %v953_v13 = vpop.f32.mrb[31].mxu1 }
 0x1fd   : > { %v954_v44 = vadd.f32 %v1556_v14, %v953_v13 }
 0x1fe   : > { %993 = vst.msk [vmem:[%s1563_s23 + $0xf8] sm:$0xff] %vm640_vm4, %v959_v12 }
 0x1ff   : > { %992 = vst.msk [vmem:[%s1563_s23 + $0xf0] sm:$0xff] %vm640_vm4, %v954_v44 }
 0x200 PF: > { %s15_s18 = sadd.s32 1, %s1345_s18  }
 0x201   : > { %p12_p4 = scmp.ge.s32.totalorder %s15_s18, 4  }
 0x203   :  { %14 = sbr.rel (!%p12_p4) target bundleno = 1 (0x1), region = 70 }

// kernel: rs_super_forward.4
= control target key start
LH: loop header
LB: loop body
LE: loop exit
PB: predicated region body
PF: predicated region fallthrough
CT: control target
= control target key end

     0   :  { %s809_s18 = smov 0   ;;  %s937_s0 = inlined_call_operand.vmem [shape: f32[128,128], index: 0, kind: input, shape index: {}]   ;;  %s938_s1 = inlined_call_operand.vmem [shape: f32[128,64], index: 1, kind: input, shape index: {}]   ;;  %s939_s2 = inlined_call_operand.vmem [shape: f32[1,64], index: 2, kind: input, shape index: {}]   ;;  %s940_s3 = inlined_call_operand.vmem [shape: f32[64,3], index: 3, kind: input, shape index: {}]   ;;  %s941_s4 = inlined_call_operand.vmem [shape: f32[1,3], index: 4, kind: input, shape index: {}]   ;;  %s942_s5 = inlined_call_operand.vmem [shape: f32[128,3], index: 5, kind: output, shape index: {}]  }
   0x1 LB: > { %s582_s19 = sadd.s32 4294967295, %s777_s18   ;;  %p586_p0 = scmp.ge.s32.totalorder %s777_s18, 1  ;;  %s777_s18 = sphi %s809_s18, %s15_s18  }
   0x2   : > { %p188_p1 = scmp.lt.s32.totalorder %s777_s18, 3 }
   0x4   : > { %p189_p2 = pnand %p586_p0, %p188_p1 }
   0x5   : > { %v236_v0 = vld [vmem:[%s938_s1] sm:$0xff] (!%p189_p2)  ;;  %v237_v1 = vld [vmem:[%s938_s1 + $0x8] sm:$0xff] (!%p189_p2)  ;;  %v238_v2 = vld [vmem:[%s938_s1 + $0x10] sm:$0xff] (!%p189_p2)  ;;  %s587_s26 = sshll.u32 (!%p189_p2), %s582_s19, 3  ;;  %vm387_vm0 = vcmask (!%p189_p2), 523264   ;;  %vm517_vm1 = vcmask (!%p189_p2), 23552  }
   0x6   : > { %192 = sbr.rel (%p189_p2) target bundleno = 486 (0x1e6), region = 40  ;;  %v715_v3 = vpack.c.bf16 (!%p189_p2), %v237_v1, %v236_v0  ;;  %v239_v4 = vld [vmem:[%s938_s1 + $0x18] sm:$0xff] (!%p189_p2)  ;;  %p217_p3 = scmp.lt.s32.totalorder (!%p189_p2), %s587_s26, 15  ;;  %v240_v6 = vld [vmem:[%s938_s1 + $0x20] sm:$0xff] (!%p189_p2)  ;;  %v241_v7 = vld [vmem:[%s938_s1 + $0x28] sm:$0xff] (!%p189_p2) }
   0x7   : > { %v719_v5 = vpack.c.bf16 (!%p189_p2), %v239_v4, %v238_v2  ;;  %v723_v8 = vpack.c.bf16 (!%p189_p2), %v241_v7, %v240_v6  ;;  %v242_v9 = vld [vmem:[%s938_s1 + $0x30] sm:$0xff] (!%p189_p2)  ;;  %v372_v10 = vld [vmem:[%s940_s3] sm:$0xff] (!%p189_p2)  ;;  %v373_v11 = vld [vmem:[%s940_s3 + $0x8] sm:$0xff] (!%p189_p2) }
   0x8   : > { %716 = vmatprep.subr.bf16.mxu0 (!%p189_p2), %v715_v3  ;;  %v243_v12 = vld [vmem:[%s938_s1 + $0x38] sm:$0xff] (!%p189_p2)  ;;  %v747_v13 = vpack.c.bf16 (!%p189_p2), %v373_v11, %v372_v10  ;;  %v374_v14 = vld [vmem:[%s940_s3 + $0x10] sm:$0xff] (!%p189_p2)  ;;  %v376_v18 = vld [vmem:[%s940_s3 + $0x20] sm:$0xff] (!%p189_p2) }
   0x9   : > { %718 = vmatpush3.bf16.msra.mxu0 (!%p189_p2), %v715_v3  ;;  %v375_v15 = vld [vmem:[%s940_s3 + $0x18] sm:$0xff] (!%p189_p2)  ;;  %v727_v19 = vpack.c.bf16 (!%p189_p2), %v243_v12, %v242_v9  ;;  %v377_v20 = vld [vmem:[%s940_s3 + $0x28] sm:$0xff] (!%p189_p2)  ;;  %v244_v21 = vld [vmem:[%s938_s1 + $0x40] sm:$0xff] (!%p189_p2) }
   0xa   : > { %720 = vmatprep.subr.bf16.mxu0 (!%p189_p2), %v719_v5  ;;  %v751_v17 = vpack.c.bf16 (!%p189_p2), %v375_v15, %v374_v14  ;;  %748 = vmatprep.subr.bf16.mxu1 (!%p189_p2), %v747_v13  ;;  %v245_v22 = vld [vmem:[%s938_s1 + $0x48] sm:$0xff] (!%p189_p2)  ;;  %v755_v23 = vpack.c.bf16 (!%p189_p2), %v377_v20, %v376_v18  ;;  %v246_v25 = vld [vmem:[%s938_s1 + $0x50] sm:$0xff] (!%p189_p2)  ;;  %v247_v26 = vld [vmem:[%s938_s1 + $0x58] sm:$0xff] (!%p189_p2) }
   0xb   : > { %750 = vmatpush3.bf16.msra.mxu1 (!%p189_p2), %v747_v13  ;;  %v731_v24 = vpack.c.bf16 (!%p189_p2), %v245_v22, %v244_v21  ;;  %v735_v27 = vpack.c.bf16 (!%p189_p2), %v247_v26, %v246_v25  ;;  %v248_v28 = vld [vmem:[%s938_s1 + $0x60] sm:$0xff] (!%p189_p2)  ;;  %v249_v29 = vld [vmem:[%s938_s1 + $0x68] sm:$0xff] (!%p189_p2)  ;;  %v250_v31 = vld [vmem:[%s938_s1 + $0x70] sm:$0xff] (!%p189_p2) }
   0xc   : > { %752 = vmatprep.subr.bf16.mxu1 (!%p189_p2), %v751_v17  ;;  %v739_v30 = vpack.c.bf16 (!%p189_p2), %v249_v29, %v248_v28  ;;  %v251_v32 = vld [vmem:[%s938_s1 + $0x78] sm:$0xff] (!%p189_p2)  ;;  %v378_v41 = vld [vmem:[%s940_s3 + $0x30] sm:$0xff] (!%p189_p2)  ;;  %v591_v44 = vld [vmem:[%s939_s2] ss:$0 sm:$0xff] (!%p189_p2) }
   0xd   : > { %s944_s26 = smov (!%p217_p3, %s587_s26), 15  ;;  %722 = vmatpush3.bf16.msra.mxu0 %v719_v5  ;;  %v743_v33 = vpack.c.bf16 %v251_v32, %v250_v31  ;;  %v379_v42 = vld [vmem:[%s940_s3 + $0x38] sm:$0xff]  ;;  %v592_v5 = vld [vmem:[%s941_s4] ss:$0 sm:$0xff] }
   0xe   : > { %s588_s10 = sshll.u32 %s944_s26, 3  ;;  %724 = vmatprep.subr.bf16.mxu0 %v723_v8  ;;  %v759_v43 = vpack.c.bf16 %v379_v42, %v378_v41 }
   0xf   : > { %s855_s20 = scalar_lea.vmem %s937_s0, %s588_s10  ;;  %754 = vmatpush3.bf16.msra.mxu1 %v751_v17  ;;  %s226_s9 = scalar_lea.vmem %s942_s5, %s588_s10 }
  0x10   : > { %v228_v16 = vld [vmem:[%s855_s20] sm:$0xff]  ;;  %756 = vmatprep.subr.bf16.mxu1 %v755_v23  ;;  %v229_v34 = vld [vmem:[%s855_s20 + $0x8] sm:$0xff]  ;;  %v230_v35 = vld [vmem:[%s855_s20 + $0x10] sm:$0xff] }
  0x11   : > { %675 = vmatprep.mubr.f32.mxu0 %v228_v16  ;;  %726 = vmatpush3.bf16.msra.mxu0 %v723_v8  ;;  %v231_v36 = vld [vmem:[%s855_s20 + $0x18] sm:$0xff]  ;;  %v232_v37 = vld [vmem:[%s855_s20 + $0x20] sm:$0xff]  ;;  %v233_v38 = vld [vmem:[%s855_s20 + $0x28] sm:$0xff] }
  0x12   : > { %728 = vmatprep.subr.bf16.mxu0 %v727_v19  ;;  %v234_v39 = vld [vmem:[%s855_s20 + $0x30] sm:$0xff]  ;;  %v235_v40 = vld [vmem:[%s855_s20 + $0x38] sm:$0xff] }
  0x13   : > { %758 = vmatpush3.bf16.msra.mxu1 %v755_v23 }
  0x14   : > { %760 = vmatprep.subr.bf16.mxu1 %v759_v43 }
  0x15   : > { %730 = vmatpush3.bf16.msra.mxu0 %v727_v19 }
  0x16   : > { %732 = vmatprep.subr.bf16.mxu0 %v731_v24 }
  0x17   : > { %762 = vmatpush3.bf16.msra.mxu1 %v759_v43 }
  0x19   : > { %734 = vmatpush3.bf16.msra.mxu0 %v731_v24 }
  0x1a   : > { %736 = vmatprep.subr.bf16.mxu0 %v735_v27 }
  0x1d   : > { %738 = vmatpush3.bf16.msra.mxu0 %v735_v27 }
  0x1e   : > { %740 = vmatprep.subr.bf16.mxu0 %v739_v30 }
  0x21   : > { %742 = vmatpush3.bf16.msra.mxu0 %v739_v30 }
  0x22   : > { %744 = vmatprep.subr.bf16.mxu0 %v743_v33 }
  0x25   : > { %746 = vmatpush3.bf16.msra.mxu0 %v743_v33 }
  0x28   : > { %676 = vmatmul.mubr.f32.vlgmr.msra.gmra.mrb[0].mxu0 %v229_v34 }
  0x29   : > { %678 = vmatprep.mubr.f32.mxu0 %v230_v35 }
  0x2c   : > { %679 = vmatmul.mubr.f32.gmra.mrb[2].mxu0 %v231_v36 }
  0x2d   : > { %681 = vmatprep.mubr.f32.mxu0 %v232_v37 }
  0x30   : > { %682 = vmatmul.mubr.f32.gmra.mrb[4].mxu0 %v233_v38 }
  0x31   : > { %684 = vmatprep.mubr.f32.mxu0 %v234_v39 }
  0x34   : > { %685 = vmatmul.mubr.f32.gmra.mrb[6].mxu0 %v235_v40 }
  0xfb   : > { %v677_v45 = vpop.f32.mrb[0].mxu0 }
  0xfc   : > { %v331_v46 = vadd.f32 %v677_v45, %v591_v44  ;;  %v325_v47 = vpop.f32.mrb[1].mxu0 }
  0xfd   : > { %v326_v48 = vadd.f32 %v591_v44, %v325_v47 }
  0xfe   : > { %v365_v51 = vmax.f32 %v331_v46, 0.0 }
  0xff   : > { %v364_v49 = vmax.f32 %v326_v48, 0.0  ;;  %v680_v50 = vpop.f32.mrb[2].mxu0 }
 0x100   : > { %v341_v52 = vadd.f32 %v680_v50, %v591_v44  ;;  %v335_v53 = vpop.f32.mrb[3].mxu0 }
 0x101   : > { %v336_v54 = vadd.f32 %v591_v44, %v335_v53  ;;  %703 = vmatprep.mubr.msk.f32.mxu1 %vm387_vm0, %v364_v49 }
 0x102   : > { %704 = vmatmul.mubr.msk.f32.vlgmr.msra.gmra.mrb[0].mxu1 %vm387_vm0, %v365_v51  ;;  %v367_v57 = vmax.f32 %v341_v52, 0.0 }
 0x103   : > { %v366_v55 = vmax.f32 %v336_v54, 0.0  ;;  %v683_v56 = vpop.f32.mrb[4].mxu0 }
 0x104   : > { %v351_v58 = vadd.f32 %v683_v56, %v591_v44  ;;  %v345_v59 = vpop.f32.mrb[5].mxu0 }
 0x105   : > { %v346_v60 = vadd.f32 %v591_v44, %v345_v59  ;;  %706 = vmatprep.mubr.msk.f32.mxu1 %vm387_vm0, %v366_v55 }
 0x106   : > { %707 = vmatmul.mubr.msk.f32.gmra.mrb[2].mxu1 %vm387_vm0, %v367_v57  ;;  %v369_v63 = vmax.f32 %v351_v58, 0.0 }
 0x107   : > { %v368_v61 = vmax.f32 %v346_v60, 0.0  ;;  %v686_v62 = vpop.f32.mrb[6].mxu0 }
 0x108   : > { %v361_v0 = vadd.f32 %v686_v62, %v591_v44  ;;  %v355_v1 = vpop.f32.mrb[7].mxu0 }
 0x109   : > { %v356_v2 = vadd.f32 %v591_v44, %v355_v1  ;;  %709 = vmatprep.mubr.msk.f32.mxu1 %vm387_vm0, %v368_v61 }
 0x10a   : > { %710 = vmatmul.mubr.msk.f32.gmra.mrb[4].mxu1 %vm387_vm0, %v369_v63  ;;  %v371_v4 = vmax.f32 %v361_v0, 0.0 }
 0x10b   : > { %v370_v3 = vmax.f32 %v356_v2, 0.0 }
 0x10d   : > { %712 = vmatprep.mubr.msk.f32.mxu1 %vm387_vm0, %v370_v3 }
 0x10e   : > { %713 = vmatmul.mubr.msk.f32.gmra.mrb[6].mxu1 %vm387_vm0, %v371_v4 }
 0x1d5   : > { %v705_v6 = vpop.f32.mrb[0].mxu1 }
 0x1d6   : > { %v484_v7 = vadd.f32 %v705_v6, %v592_v5  ;;  %v478_v8 = vpop.f32.mrb[1].mxu1 }
 0x1d7   : > { %v479_v9 = vadd.f32 %v592_v5, %v478_v8 }
 0x1d8   : > { %519 = vst.msk [vmem:[%s226_s9 + $0x8] sm:$0xff] %vm517_vm1, %v484_v7 }
 0x1d9   : > { %518 = vst.msk [vmem:[%s226_s9] sm:$0xff] %vm517_vm1, %v479_v9  ;;  %v708_v10 = vpop.f32.mrb[2].mxu1 }
 0x1da   : > { %v494_v11 = vadd.f32 %v708_v10, %v592_v5  ;;  %v488_v12 = vpop.f32.mrb[3].mxu1 }
 0x1db   : > { %v489_v13 = vadd.f32 %v592_v5, %v488_v12 }
 0x1dc   : > { %521 = vst.msk [vmem:[%s226_s9 + $0x18] sm:$0xff] %vm517_vm1, %v494_v11 }
 0x1dd   : > { %520 = vst.msk [vmem:[%s226_s9 + $0x10] sm:$0xff] %vm517_vm1, %v489_v13  ;;  %v711_v14 = vpop.f32.mrb[4].mxu1 }
 0x1de   : > { %v504_v15 = vadd.f32 %v711_v14, %v592_v5  ;;  %v498_v16 = vpop.f32.mrb[5].mxu1 }
 0x1df   : > { %v499_v17 = vadd.f32 %v592_v5, %v498_v16 }
 0x1e0   : > { %523 = vst.msk [vmem:[%s226_s9 + $0x28] sm:$0xff] %vm517_vm1, %v504_v15 }
 0x1e1   : > { %522 = vst.msk [vmem:[%s226_s9 + $0x20] sm:$0xff] %vm517_vm1, %v499_v17  ;;  %v714_v18 = vpop.f32.mrb[6].mxu1 }
 0x1e2   : > { %v514_v19 = vadd.f32 %v714_v18, %v592_v5  ;;  %v508_v20 = vpop.f32.mrb[7].mxu1 }
 0x1e3   : > { %v509_v21 = vadd.f32 %v592_v5, %v508_v20 }
 0x1e4   : > { %525 = vst.msk [vmem:[%s226_s9 + $0x38] sm:$0xff] %vm517_vm1, %v514_v19 }
 0x1e5   : > { %524 = vst.msk [vmem:[%s226_s9 + $0x30] sm:$0xff] %vm517_vm1, %v509_v21 }
 0x1e6 PF: > { %s15_s18 = sadd.s32 1, %s777_s18  }
 0x1e7   : > { %p12_p4 = scmp.ge.s32.totalorder %s15_s18, 4  }
 0x1e9   :  { %14 = sbr.rel (!%p12_p4) target bundleno = 1 (0x1), region = 70 }

</bundles_post_ra>
